<compile_context>
chip_gen: v7x
topology: tpu7x:2x2x1
jax: 0.10.0
libtpu: 0.0.40
codegen_flags: <defaults>
</compile_context>

<pallas_src>
import functools

import jax
import jax.numpy as jnp
from jax.experimental import pallas as pl
from jax.experimental.pallas import tpu as pltpu


def _attn_kernel(x_ref, w_ref, b_ref, o_ref, *, f_pad):
    # x_ref block: (Bb, L, D) ; w_ref: (D, 3*Fp) ; b_ref: (1, 3*Fp)
    bb, L, D = x_ref.shape

    # ---- Fused QKV projection: one MXU matmul (Bb*L, D) x (D, 3*Fp) ----
    x2 = x_ref[...].reshape(bb * L, D)
    qkv = jnp.dot(x2, w_ref[...], preferred_element_type=jnp.float32) + b_ref[...]
    qkv = qkv.reshape(bb, L, 3 * f_pad)

    # Static, 128-aligned lane slices (cheap).
    q = qkv[:, :, 0 * f_pad:1 * f_pad]   # scale_factor already folded into W/b
    k = qkv[:, :, 1 * f_pad:2 * f_pad]
    v = qkv[:, :, 2 * f_pad:3 * f_pad]

    # ---- Scores: contract last dims directly (no explicit transpose) ----
    s = jnp.einsum("bqf,bkf->bqk", q, k, preferred_element_type=jnp.float32)

    # ---- Numerically stable softmax over the last axis ----
    m = jnp.max(s, axis=-1, keepdims=True)
    p = jnp.exp(s - m)
    denom = jnp.sum(p, axis=-1, keepdims=True)
    p = p * pl.reciprocal(denom, approx=True)   # EUP vrcp, ~1e-4 rel. error

    # TODO(synk): F.dropout is random; implemented as inference-mode identity.
    # Training-mode masking would need pltpu.prng_seed + pltpu.prng_random_bits.

    # ---- Attention output: softmax @ V ----
    out = jnp.einsum("bqk,bkf->bqf", p, v, preferred_element_type=jnp.float32)
    o_ref[...] = out.astype(o_ref.dtype)


def attention_forward(x, wq, bq, wk, bk, wv, bv, *, scale_factor=1.0, block_b=None):
    """x: (B, L, D); w*: (D, F); b*: (1, F) -> (B, L, F)."""
    B, L, D = x.shape
    F = wq.shape[1]
    Fp = max(128, ((F + 127) // 128) * 128)   # lane-dense padded feature dim

    if block_b is None:
        # Keep >=2 grid steps when B allows it (v7x megacore gets both TCs),
        # otherwise collapse everything into a single step.
        block_b = B // 2 if (B >= 2 and B % 2 == 0) else B
    assert B % block_b == 0, "block_b must divide B"

    pad = Fp - F

    def pad_w(w):
        return jnp.pad(w, ((0, 0), (0, pad)))

    def pad_b(b):
        return jnp.pad(b, ((0, 0), (0, pad)))

    # Fold scale_factor into the Q projection; padded columns are zero so the
    # padded q/k lanes contribute 0 to q@k^T and padded v lanes stay 0.
    sf = jnp.asarray(scale_factor, dtype=x.dtype)
    w_fused = jnp.concatenate([pad_w(wq * sf), pad_w(wk), pad_w(wv)], axis=1)  # (D, 3*Fp)
    b_fused = jnp.concatenate([pad_b(bq * sf), pad_b(bk), pad_b(bv)], axis=1)  # (1, 3*Fp)

    kernel = functools.partial(_attn_kernel, f_pad=Fp)

    out_padded = pl.pallas_call(
        kernel,
        out_shape=jax.ShapeDtypeStruct((B, L, Fp), x.dtype),
        grid_spec=pltpu.PrefetchScalarGridSpec(
            num_scalar_prefetch=0,
            grid=(B // block_b,),
            in_specs=[
                pl.BlockSpec((block_b, L, D), lambda b: (b, 0, 0)),   # x
                pl.BlockSpec((D, 3 * Fp), lambda b: (0, 0)),          # fused W
                pl.BlockSpec((1, 3 * Fp), lambda b: (0, 0)),          # fused bias
            ],
            out_specs=pl.BlockSpec((block_b, L, Fp), lambda b: (b, 0, 0)),
        ),
        compiler_params=pltpu.CompilerParams(
            dimension_semantics=("parallel",),
        ),
    )(x, w_fused, b_fused)

    return out_padded[:, :, :F]


def reference_forward(x, wq, bq, wk, bk, wv, bv, scale_factor=1.0):
    q = x @ wq + bq
    k = x @ wk + bk
    v = x @ wv + bv
    qk = jnp.einsum("blf,bmf->blm", q, k) * scale_factor
    sm = jax.nn.softmax(qk, axis=-1)
    return jnp.einsum("blm,bmf->blf", sm, v)


if __name__ == "__main__":
    # Small shapes consistent with the module's forward:
    #   sequence: (B, L, seq_len) ; Linear(seq_len -> ff_dim)
    B, L, SEQ_LEN, FF_DIM = 2, 8, 16, 32
    SCALE_FACTOR = 0.25

    key = jax.random.PRNGKey(0)
    kx, kq, kk, kv, kbq, kbk, kbv = jax.random.split(key, 7)

    x = jax.random.normal(kx, (B, L, SEQ_LEN), dtype=jnp.float32)

    # Deterministic parameter init (uniform like torch.nn.Linear default bound)
    bound = 1.0 / (SEQ_LEN ** 0.5)
    wq = jax.random.uniform(kq, (SEQ_LEN, FF_DIM), minval=-bound, maxval=bound)
    wk = jax.random.uniform(kk, (SEQ_LEN, FF_DIM), minval=-bound, maxval=bound)
    wv = jax.random.uniform(kv, (SEQ_LEN, FF_DIM), minval=-bound, maxval=bound)
    bq = jax.random.uniform(kbq, (1, FF_DIM), minval=-bound, maxval=bound)
    bk = jax.random.uniform(kbk, (1, FF_DIM), minval=-bound, maxval=bound)
    bv = jax.random.uniform(kbv, (1, FF_DIM), minval=-bound, maxval=bound)

    out = attention_forward(x, wq, bq, wk, bk, wv, bv, scale_factor=SCALE_FACTOR)
    out = jax.block_until_ready(out)

    ref = reference_forward(x, wq, bq, wk, bk, wv, bv, SCALE_FACTOR)
    assert out.shape == (B, L, FF_DIM)
    # tolerance loosened slightly for the approx (EUP) reciprocal in softmax
    assert jnp.allclose(out, ref, atol=2e-3, rtol=2e-3), "mismatch vs reference"

    print("KERNEL_OK")
</pallas_src>

<mosaic_0001>
module attributes {stable_mosaic.version = 11 : i64} {
  func.func @_attn_kernel(%arg0: i32, %arg1: memref<1x8x16xf32, #tpu.memory_space<vmem>>, %arg2: memref<16x384xf32, #tpu.memory_space<vmem>>, %arg3: memref<1x384xf32, #tpu.memory_space<vmem>>, %arg4: memref<1x8x128xf32, #tpu.memory_space<vmem>>) attributes {dimension_semantics = [#tpu.dimension_semantics<parallel>], iteration_bounds = array<i64: 2>, scalar_prefetch = 0 : i64, scratch_operands = 0 : i64, tpu.core_type = #tpu.core_type<tc>, window_params = [{transform_indices = @transform_0, window_bounds = array<i64: 1, 8, 16>}, {pipeline_mode = #tpu.pipeline_mode<synchronous>, transform_indices = @transform_1, window_bounds = array<i64: 16, 384>}, {pipeline_mode = #tpu.pipeline_mode<synchronous>, transform_indices = @transform_2, window_bounds = array<i64: 1, 384>}, {transform_indices = @transform_3, window_bounds = array<i64: 1, 8, 128>}]} {
    %c0 = arith.constant 0 : index
    %c0_0 = arith.constant 0 : index
    %c0_1 = arith.constant 0 : index
    %0 = vector.load %arg1[%c0, %c0_0, %c0_1] : memref<1x8x16xf32, #tpu.memory_space<vmem>>, vector<1x8x16xf32>
    %1 = vector.shape_cast %0 : vector<1x8x16xf32> to vector<8x16xf32>
    %c0_2 = arith.constant 0 : index
    %c0_3 = arith.constant 0 : index
    %2 = vector.load %arg2[%c0_2, %c0_3] : memref<16x384xf32, #tpu.memory_space<vmem>>, vector<16x384xf32>
    %cst = arith.constant dense<0.000000e+00> : vector<8x384xf32>
    %3 = tpu.matmul %1, %2, %cst {dimension_numbers = #tpu.dot_dimension_numbers<[1], [0], [0], [1], [0, 0, 1, 1], [], []>} : vector<8x16xf32>, vector<16x384xf32>, vector<8x384xf32> -> vector<8x384xf32>
    %c0_4 = arith.constant 0 : index
    %c0_5 = arith.constant 0 : index
    %4 = vector.load %arg3[%c0_4, %c0_5] : memref<1x384xf32, #tpu.memory_space<vmem>>, vector<1x384xf32>
    %5 = vector.broadcast %4 : vector<1x384xf32> to vector<8x384xf32>
    %6 = arith.addf %3, %5 : vector<8x384xf32>
    %7 = vector.shape_cast %6 : vector<8x384xf32> to vector<1x8x384xf32>
    %8 = vector.extract_strided_slice %7 {offsets = [0, 0, 0], sizes = [1, 8, 128], strides = [1, 1, 1]} : vector<1x8x384xf32> to vector<1x8x128xf32>
    %9 = vector.extract_strided_slice %7 {offsets = [0, 0, 128], sizes = [1, 8, 128], strides = [1, 1, 1]} : vector<1x8x384xf32> to vector<1x8x128xf32>
    %10 = vector.extract_strided_slice %7 {offsets = [0, 0, 256], sizes = [1, 8, 128], strides = [1, 1, 1]} : vector<1x8x384xf32> to vector<1x8x128xf32>
    "tpu.trace_start"() <{level = 10 : i32, message = "bqf,bkf->bqk"}> : () -> ()
    %cst_6 = arith.constant dense<0.000000e+00> : vector<1x8x8xf32>
    %11 = tpu.matmul %8, %9, %cst_6 {dimension_numbers = #tpu.dot_dimension_numbers<[2], [2], [1], [1], [0, 0, 0, 1, 1, 1], [0], [0]>} : vector<1x8x128xf32>, vector<1x8x128xf32>, vector<1x8x8xf32> -> vector<1x8x8xf32>
    "tpu.trace_stop"() : () -> ()
    %cst_7 = arith.constant dense<0xFF800000> : vector<1x8xf32>
    %12 = vector.multi_reduction <maximumf>, %11, %cst_7 [2] : vector<1x8x8xf32> to vector<1x8xf32>
    %13 = vector.shape_cast %12 : vector<1x8xf32> to vector<1x8x1xf32>
    %14 = vector.broadcast %13 : vector<1x8x1xf32> to vector<1x8x8xf32>
    %15 = arith.subf %11, %14 : vector<1x8x8xf32>
    %16 = math.exp %15 : vector<1x8x8xf32>
    %cst_8 = arith.constant dense<0.000000e+00> : vector<1x8xf32>
    %17 = vector.multi_reduction <add>, %16, %cst_8 [2] : vector<1x8x8xf32> to vector<1x8xf32>
    %18 = vector.shape_cast %17 : vector<1x8xf32> to vector<1x8x1xf32>
    %19 = tpu.reciprocal %18 {approx = true} : vector<1x8x1xf32> -> vector<1x8x1xf32>
    %20 = vector.broadcast %19 : vector<1x8x1xf32> to vector<1x8x8xf32>
    %21 = arith.mulf %16, %20 : vector<1x8x8xf32>
    "tpu.trace_start"() <{level = 10 : i32, message = "bqk,bkf->bqf"}> : () -> ()
    %cst_9 = arith.constant dense<0.000000e+00> : vector<1x8x128xf32>
    %22 = tpu.matmul %21, %10, %cst_9 {dimension_numbers = #tpu.dot_dimension_numbers<[2], [1], [1], [2], [0, 0, 0, 1, 1, 2], [0], [0]>} : vector<1x8x8xf32>, vector<1x8x128xf32>, vector<1x8x128xf32> -> vector<1x8x128xf32>
    "tpu.trace_stop"() : () -> ()
    %c0_10 = arith.constant 0 : index
    %c0_11 = arith.constant 0 : index
    %c0_12 = arith.constant 0 : index
    %23 = vector.load %arg4[%c0_10, %c0_11, %c0_12] : memref<1x8x128xf32, #tpu.memory_space<vmem>>, vector<1x8x128xf32>
    tpu.vector_store %arg4[%c0_10, %c0_11, %c0_12], %22 {strides = array<i32>} : memref<1x8x128xf32, #tpu.memory_space<vmem>>, vector<1x8x128xf32>,
    return
  }
  func.func @transform_0(%arg0: i32) -> (i32, i32, i32) {
    %c0_i32 = arith.constant 0 : i32
    %c0_i32_0 = arith.constant 0 : i32
    %c0_i32_1 = arith.constant 0 : i32
    return %arg0, %c0_i32, %c0_i32_0 : i32, i32, i32
  }
  func.func @transform_1(%arg0: i32) -> (i32, i32) {
    %c0_i32 = arith.constant 0 : i32
    %c0_i32_0 = arith.constant 0 : i32
    %c0_i32_1 = arith.constant 0 : i32
    return %c0_i32, %c0_i32_0 : i32, i32
  }
  func.func @transform_2(%arg0: i32) -> (i32, i32) {
    %c0_i32 = arith.constant 0 : i32
    %c0_i32_0 = arith.constant 0 : i32
    %c0_i32_1 = arith.constant 0 : i32
    return %c0_i32, %c0_i32_0 : i32, i32
  }
  func.func @transform_3(%arg0: i32) -> (i32, i32, i32) {
    %c0_i32 = arith.constant 0 : i32
    %c0_i32_0 = arith.constant 0 : i32
    %c0_i32_1 = arith.constant 0 : i32
    return %arg0, %c0_i32, %c0_i32_0 : i32, i32, i32
  }
}

</mosaic_0001>

<bundles_post_ra>
// kernel: tpu_custom_call.1
= control target key start
LH: loop header
LB: loop body
LE: loop exit
PB: predicated region body
PF: predicated region fallthrough
CT: control target
= control target key end

     0   :  { %8 = vsyncpa [#allocation3], 0  ;;  %s1103_s0 = inlined_call_operand.hbm [shape: f32[2,8,16], index: 0, kind: input, shape index: {}]   ;;  %s1104_s1 = inlined_call_operand.hbm [shape: f32[16,384], index: 1, kind: input, shape index: {}]   ;;  %s1105_s2 = inlined_call_operand.vmem [shape: f32[1,384], index: 2, kind: input, shape index: {}]   ;;  %s1106_s3 = inlined_call_operand.hbm [shape: f32[2,8,128], index: 3, kind: output, shape index: {}]  }
   0x1   :  { %10 = vsyncpa [#allocation3 + $0x1], 0 }
   0x2   :  { %11 = vsyncpa [#allocation6], 0 }
   0x3   :  { %12 = vsyncpa [#allocation4], 0 }
   0x4   :  { %14 = vsyncpa [#allocation4 + $0x1], 0  ;;  %s892_s12 = smov 0   ;;  %s894_s13 = smov 0  }
   0x5   :  { %s896_s14 = smov 0   ;;  %s898_s15 = smov 0  }
   0x6 LB: > { %s913_s16 = sadd.s32 4294967295, %s862_s15   ;;  %s620_s17 = sadd.s32 4294967294, %s862_s15   ;;  %s862_s15 = sphi %s898_s15, %s1126_s15   ;;  %s858_s14 = sphi %s896_s14, %s1125_s14   ;;  %s854_s13 = sphi %s894_s13, %s1124_s13   ;;  %s850_s12 = sphi %s892_s12, %s1123_s12  }
   0x7   : > { %p40_p0 = scmp.ne.s32.totalorder %s854_s13, %s850_s12  ;;  %p1107_p1 = scmp.eq.s32.totalorder %s913_s16, 0 }
   0x8   : > { %p112_p3 = scmp.eq.s32.totalorder %s620_s17, 1  ;;  %p621_p5 = scmp.ge.s32.totalorder %s862_s15, 1 }
   0x9   : > { %p922_p4 = por %p1107_p1, %p40_p0  ;;  %p119_p7 = scmp.lt.s32.totalorder %s862_s15, 3 }
   0xa   : > { %p927_p6 = por %p112_p3, %p40_p0  ;;  %s864_s21 = smov [#allocation5]  }
   0xb   : > { %s1110_s18 = scalar_select %p922_p4, 1, 0 }
   0xc   : > { %s1111_s19 = scalar_select %p927_p6, 1, 0 }
   0xd   : > { %p932_p8 = pnand %p621_p5, %p119_p7  ;;  %s131_s22 = sshll.u32 %s864_s21, 4  ;;  %s936_s22 = int_to_ptr.vmem [resolvable:$true] %s131_s22 }
   0xe   : > { %s948_s24 = sadd.s32 1, %s862_s15   ;;  %s27_s25 = sadd.s32 1, %s858_s14 }
   0xf   : > { %s1112_s20 = scalar_select %p932_p8, 1, 0 }
  0x10   : > { %p676_p9 = pneg %p932_p8  ;;  %s24_s26 = ssub.s32 %s862_s15, %s948_s24 }
  0x11   : > { %s734_s29 = scalar_lea.hbm %s1104_s1, 768 }
  0x12   : > { %p943_p11 = pnand %p676_p9, %p1107_p1  ;;  %p735_p12 = scmp.ne.s32.totalorder %s1104_s1, %s734_s29 }
  0x13   : > { %p741_p5 = scmp.lt.u32.totalorder %s734_s29, %s1104_s1 }
  0x14   : > { %p736_p13 = pneg %p943_p11 }
  0x16   : > { %p737_p0 = pnand %p736_p13, %p735_p12 }
  0x18   : > { %p738_p3 = pneg %p737_p0 }
  0x1a   : > { %p743_p7 = pnand %p741_p5, %p738_p3 }
  0x1c   : > { %746 = shalt.err (!%p743_p7)
}
  0x1d   : > { %s747_s7 = scalar_lea.vmem %s936_s22, 768  ;;  %p755_p2 = scmp.lt.s32.totalorder %s936_s22, %s936_s22 }
  0x1e   : > { %p748_p9 = scmp.ne.s32.totalorder %s936_s22, %s747_s7  ;;  %p756_p6 = scmp.lt.s32.totalorder %s747_s7, %s747_s7 }
  0x20   : > { %p750_p10 = pnand %p748_p9, %p736_p13  ;;  %p757_p4 = por %p756_p6, %p755_p2 }
  0x22   : > { %p751_p1 = pneg %p750_p10 }
  0x24   : > { %p758_p8 = pnand %p757_p4, %p751_p1 }
  0x26   : > { %761 = shalt.err (!%p758_p8)
}
  0x27   : > { %s865_s8 = smov 384   ;;  %s866_s9 = smov 24  }
  0x28   : > { %679 = dma.hbm_to_vmem [thread:$0]  (!%p943_p11), %s1104_s1, 768, %s936_s22, [#allocation6], %s865_s8, %s865_s8, %s866_s9  }
  0x29   : > { %p25_p2 = scmp.eq.s32.totalorder %s24_s26, 0  ;;  %p34_p1 = scmp.ne.s32.totalorder %s858_s14, %s854_s13 }
  0x2a   : > { %p35_p4 = scmp.eq.s32.totalorder %s862_s15, 0  ;;  %p689_p6 = scmp.lt.s32.totalorder %s862_s15, 2 }
  0x2b   : > { %s979_s17 = scalar_select %p25_p2, %s858_s14, %s27_s25  }
  0x2c   : > { %p36_p8 = por %p35_p4, %p34_p1  ;;  %p1114_p10 = scmp.eq.s32.totalorder %s913_s16, 1 }
  0x2d   : > { %s148_s27 = sand.u32 1, %s858_s14   ;;  %s625_s28 = sshll.u32 %s862_s15, 7 }
  0x2e   : > { %p983_p12 = por %p1114_p10, %p34_p1  ;;  %s624_s29 = sshll.u32 %s148_s27, 3 }
  0x2f   : > { %s992_s4 = scalar_lea.hbm %s1103_s0, %s625_s28  ;;  %s152_s22 = scalar_lea.vmem [#allocation2], %s624_s29 }
  0x30   : > { %s159_s25 = sshll.u32 %s152_s22, 4  ;;  %p994_p11 = pnand %p689_p6, %p36_p8  ;;  %s998_s25 = int_to_ptr.vmem [resolvable:$true] %s159_s25 }
  0x31   : > { %s149_s5 = scalar_lea.sflag [#allocation3], %s148_s27  ;;  %s762_s6 = scalar_lea.hbm %s992_s4, 128 }
  0x32   : > { %p763_p13 = scmp.ne.s32.totalorder %s992_s4, %s762_s6  ;;  %p764_p0 = pneg %p994_p11 }
  0x33   : > { %s767_s9 = scalar_lea.hbm %s1103_s0, 256  ;;  %p768_p7 = scmp.lt.u32.totalorder %s992_s4, %s1103_s0 }
  0x34   : > { %p765_p3 = pnand %p764_p0, %p763_p13  ;;  %p769_p9 = scmp.lt.u32.totalorder %s767_s9, %s762_s6 }
  0x35   : > { %p771_p1 = scmp.lt.u32.totalorder %s762_s6, %s992_s4 }
  0x36   : > { %p766_p5 = pneg %p765_p3  ;;  %p770_p2 = por %p769_p9, %p768_p7 }
  0x38   : > { %p772_p4 = por %p771_p1, %p770_p2 }
  0x3a   : > { %p773_p6 = pnand %p772_p4, %p766_p5 }
  0x3c   : > { %776 = shalt.err (!%p773_p6)
}
  0x3d   : > { %s777_s27 = scalar_lea.vmem %s998_s25, 128  ;;  %s867_s28 = smov [#allocation2]  }
  0x3e   : > { %p778_p8 = scmp.ne.s32.totalorder %s998_s25, %s777_s27  ;;  %s782_s29 = sshll.u32 %s867_s28, 4  ;;  %s783_s29 = int_to_ptr.vmem [resolvable:$false] %s782_s29 }
  0x3f   : > { %s784_s23 = scalar_lea.vmem %s783_s29, 256  ;;  %p785_p3 = scmp.lt.s32.totalorder %s998_s25, %s783_s29 }
  0x40   : > { %p780_p10 = pnand %p778_p8, %p764_p0  ;;  %p786_p7 = scmp.lt.s32.totalorder %s784_s23, %s777_s27 }
  0x42   : > { %p781_p13 = pneg %p780_p10  ;;  %p787_p9 = por %p786_p7, %p785_p3 }
  0x44   : > { %p788_p2 = pnand %p787_p9, %p781_p13 }
  0x46   : > { %791 = shalt.err (!%p788_p2)
}
  0x47   : > { %683 = dma.hbm_to_vmem [thread:$0]  (!%p994_p11), %s992_s4, 128, %s998_s25, %s149_s5  }
  0x48   : > { %p1117_p5 = scmp.ne.s32.totalorder %s1112_s20, 0 }
  0x49   : > { %s1028_s30 = sand.u32 (!%p1117_p5), 1, %s854_s13   ;;  %p1118_p0 = scmp.ne.s32.totalorder (!%p1117_p5), %s1110_s18, 0 }
  0x4a   : > { %168 = sbr.rel (%p1117_p5) target bundleno = 1062 (0x426), region = 32  ;;  %s627_s22 = sshll.u32 (!%p1117_p5), %s1028_s30, 3 }
  0x4b   : > { %s171_s6 = scalar_lea.sflag (!%p1117_p5), [#allocation3], %s1028_s30  ;;  %s174_s7 = scalar_lea.vmem (!%p1117_p5), [#allocation2], %s627_s22 }
  0x51   : > { %837 = dma.done.wait (%p1118_p0), %s171_s6, 128  }
  0x52   : > { %839 = vsyncadd (%p1118_p0), %s171_s6, 4294967168  ;;  %p1119_p11 = scmp.eq.s32.totalorder %s913_s16, 0 }
  0x54   : > { %841 = dma.done.wait (%p1119_p11), [#allocation6], 768   ;;  %p1120_p1 = pmov %p1119_p11 }
  0x55   : > { %v868_v0 = vmov 0.0   ;;  %v203_v1 = vld [vmem:[#allocation5 + $0x8] sm:$0xff]  ;;  %v206_v2 = vld [vmem:[#allocation5 + $0x20] sm:$0xff]  ;;  %v205_v5 = vld [vmem:[#allocation5 + $0x18] sm:$0xff]  ;;  %vm225_vm0 = vcmask 130048   ;;  %vm869_vm1 = vmmov 0   ;;  %v210_v8 = vlaneseq }
  0x56   : > { %843 = vsyncadd (%p1120_p1), [#allocation6], 4294966528  ;;  %293 = vmatprep.mubr.f32.mxu0 %v868_v0  ;;  %v202_v3 = vld [vmem:[#allocation5] sm:$0xff]  ;;  %v661_v4 = vpack.c.bf16 %v206_v2, %v203_v1  ;;  %v201_v7 = vld [vmem:[%s174_s7] sm:$0xff]  ;;  %648 = vmatprep.mubr.msk.f32.mxu1 %vm869_vm1, %v868_v0  ;;  %v870_v21 = vmov 0.0|0.0   ;;  %vm440_vm2 = vcmask 64512  }
  0x57   : > { %v663_v6 = vpack.c.bf16 %v205_v5, %v202_v3  ;;  %v211_v9 = vshrl.u32 %v210_v8, 7  ;;  %v208_v11 = vld [vmem:[%s1105_s2] sm:$0x7]  ;;  %v207_v20 = vld [vmem:[#allocation5 + $0x28] sm:$0xff]  ;;  %665 = vmatprep.subr.bf16.mxu1 %v870_v21  ;;  %s200_s4 = scalar_lea.vmem [#allocation7], %s627_s22  ;;  %s634_s26 = sshll.u32 %s913_s16, 7 }
  0x58   : > { %662 = vmatprep.subr.bf16.mxu0 %v661_v4  ;;  %v204_v19 = vld [vmem:[#allocation5 + $0x10] sm:$0xff]  ;;  %s540_s25 = sshll.u32 %s200_s4, 4  ;;  %s1061_s9 = scalar_lea.hbm %s1106_s3, %s634_s26  ;;  %s1056_s25 = int_to_ptr.vmem [resolvable:$true] %s540_s25 }
  0x59   : > { %664 = vmatpush1.bf16.msra.mxu0 %v663_v6  ;;  %v216_v10 = vsub.s32 1, %v211_v9  ;;  %v212_v12 = vsub.s32 0, %v211_v9  ;;  %v666_v22 = vpack.c.bf16 %v207_v20, %v204_v19  ;;  %v220_v31 = vsub.s32 2, %v211_v9  ;;  %s527_s10 = scalar_lea.sflag [#allocation4], %s1028_s30  ;;  %s792_s11 = scalar_lea.vmem %s1056_s25, 128 }
  0x5a   : > { %651 = vmatprep.subr.mxu0 %v868_v0  ;;  %p793_p4 = scmp.ne.s32.totalorder %s1056_s25, %s792_s11  ;;  %s871_s16 = smov [#allocation7]  }
  0x5b   : > { %v217_v13 = vrot.slane %v208_v11, %v216_v10  ;;  %v213_v15 = vrot.slane %v208_v11, %v212_v12  ;;  %667 = vmatpush3.bf16.msra.mxu1 %v666_v22  ;;  %v221_v32 = vrot.slane %v208_v11, %v220_v31  ;;  %s796_s27 = sshll.u32 %s871_s16, 4  ;;  %s797_s27 = int_to_ptr.vmem [resolvable:$false] %s796_s27 }
  0x5c   : > { %630 = vmatmul.mubr.msk.f32.vlgmr.msra.gmra.mrb[0].mxu0 %vm225_vm0, %v201_v7  ;;  %656 = vmatprep.subr.mxu1 %v868_v0  ;;  %p794_p6 = pnand %p793_p4, %p983_p12  ;;  %s798_s28 = scalar_lea.vmem %s797_s27, 256 }
  0x5d   : > { %653 = vmatprep.mubr.msk.f32.mxu0 %vm869_vm1, %v868_v0  ;;  %p799_p10 = scmp.lt.s32.totalorder %s1056_s25, %s797_s27  ;;  %p800_p13 = scmp.lt.s32.totalorder %s798_s28, %s792_s11 }
  0x5e   : > { %649 = vmatmul.mubr.msk.f32.vlgmr.msra.gmra.mrb[0].mxu1 %vm225_vm0, %v201_v7  ;;  %p795_p8 = pneg %p794_p6 }
  0x5f   : > { %658 = vmatprep.mubr.msk.f32.mxu1 %vm869_vm1, %v868_v0  ;;  %p801_p3 = por %p800_p13, %p799_p10 }
  0x61   : > { %p802_p7 = pnand %p801_p3, %p795_p8 }
 0x12f   : > { %v295_v14 = vpop.f32.mrb[0].mxu0 }
 0x130   : > { %v297_v16 = vpop.f32.mrb[1].mxu0  ;;  %v296_v18 = vadd.f32 %v295_v14, %v213_v15 }
 0x131   : > { %v298_v17 = vadd.f32 %v297_v16, %v217_v13  ;;  %v366_v33 = vpop.f32.mrb[0].mxu1 }
 0x132   : > { %v650_v34 = vpop.f32.mrb[1].mxu1  ;;  %v367_v35 = vadd.f32 %v366_v33, %v221_v32 }
 0x133   : > { %652 = vmatpush3.xpose.msra.mxu0 %v298_v17 }
 0x134   : > { %657 = vmatpush3.msra.mxu1 %v367_v35 }
 0x136   : > { %654 = vmatmul.mubr.f32.vlgmr.msra.gmra.mrb[2].mxu0 %v296_v18 }
 0x209   : > { %v436_v23 = vpop.f32.mrb[2].mxu0 }
 0x20a   : > { %v655_v24 = vpop.f32.mrb[3].mxu0  ;;  %v441_v25 = vsel %vm440_vm2, %v436_v23, -inf }
 0x20b   : > { %442 = vmax.xlane.f32.xlu0 %v441_v25 }
 0x298   : > { %v443_v26 = vpop.xlane.xlu0 %442 }
 0x299   : > { %v444_v27 = vsub.f32 %v436_v23, %v443_v26 }
 0x29b   : > { %v445_v28 = vmul.f32 1.442695, %v444_v27 }
 0x29d   : > { %730 = vpow2.f32 %v445_v28 }
 0x2a7   : > { %v731_v29 = vpop.eup %730 }
 0x2a8   : > { %v447_v30 = vsel %vm440_vm2, %v731_v29, 0.0 }
 0x2a9   : > { %448 = vadd.xlane.f32.xlu0 %v447_v30 }
 0x336   : > { %v449_v36 = vpop.xlane.xlu0 %448 }
 0x337   : > { %732 = vrcp.f32 %v449_v36 }
 0x341   : > { %v733_v37 = vpop.eup %732 }
 0x342   : > { %v451_v38 = vmul.f32 %v733_v37, %v731_v29 }
 0x344   : > { %659 = vmatmul.mubr.msk.f32.vlgmr.msra.gmra.mrb[2].mxu1 %vm440_vm2, %v451_v38 }
 0x417   : > { %v521_v39 = vpop.f32.mrb[2].mxu1 }
 0x418   : > { %525 = vst [vmem:[%s200_s4] sm:$0xff] %v521_v39  ;;  %v660_v40 = vpop.f32.mrb[3].mxu1 }
 0x419   : > { %805 = shalt.err (!%p802_p7)
}
 0x41a   : > { %s806_s29 = scalar_lea.hbm %s1061_s9, 128  ;;  %s810_s22 = scalar_lea.hbm %s1106_s3, 256 }
 0x41b   : > { %p807_p9 = scmp.ne.s32.totalorder %s1061_s9, %s806_s29  ;;  %p811_p0 = scmp.lt.u32.totalorder %s1061_s9, %s1106_s3 }
 0x41c   : > { %p812_p11 = scmp.lt.u32.totalorder %s810_s22, %s806_s29  ;;  %p814_p4 = scmp.lt.u32.totalorder %s806_s29, %s1061_s9 }
 0x41d   : > { %p808_p2 = pnand %p807_p9, %p983_p12 }
 0x41e   : > { %p813_p1 = por %p812_p11, %p811_p0 }
 0x41f   : > { %p809_p5 = pneg %p808_p2 }
 0x420   : > { %p815_p6 = por %p814_p4, %p813_p1 }
 0x422   : > { %p816_p8 = pnand %p815_p6, %p809_p5 }
 0x424   : > { %819 = shalt.err (!%p816_p8)
}
 0x425   : > { %674 = dma.vmem_to_hbm [thread:$0]  (%p983_p12), %s1056_s25, 128, %s1061_s9, %s527_s10  }
 0x426 PF: > { %s552_s18 = sand.u32 1, %s850_s12   ;;  %p1121_p10 = scmp.ne.s32.totalorder %s1111_s19, 0 }
 0x427   : > { %p1122_p13 = scmp.ge.s32.totalorder %s862_s15, 2  ;;  %s553_s20 = scalar_lea.sflag [#allocation4], %s552_s18 }
 0x429   : > { %p685_p3 = pnand %p1122_p13, %p1121_p10 }
 0x42b   : > { %845 = dma.done.wait (!%p685_p3), %s553_s20, 128  }
 0x42c   : > { %847 = vsyncadd (!%p685_p3), %s553_s20, 4294967168  ;;  %p17_p7 = scmp.ge.s32.totalorder %s948_s24, 4   ;;  %s1123_s12 = smov %s854_s13 }
 0x42d   : > { %s1124_s13 = smov %s858_s14  ;;  %s1125_s14 = smov %s979_s17 }
 0x42e   : > { %s1126_s15 = smov %s948_s24  ;;  %19 = sbr.rel (!%p17_p7) target bundleno = 6 (0x6), region = 81 }
 0x435   :  { %558 = vsyncpa [#allocation3], 1 }
 0x436   :  { %560 = vsyncpa [#allocation3 + $0x1], 1 }
 0x437   :  { %561 = vsyncpa [#allocation6], 1 }
 0x438   :  { %562 = vsyncpa [#allocation4], 1 }
 0x439   :  { %564 = vsyncpa [#allocation4 + $0x1], 1 }

</bundles_post_ra>
